<compile_context>
chip_gen: v7x
topology: tpu7x:2x2x1
jax: 0.10.0
libtpu: 0.0.40
codegen_flags: <defaults>
</compile_context>

<pallas_src>
import jax
import jax.numpy as jnp
from jax.experimental import pallas as pl
from jax.experimental.pallas import tpu as pltpu

LANE = 128     # minor (lane) dim granularity
SUBLANE = 8    # second-minor (sublane) dim granularity for f32


def _round_up(n, m):
    return ((n + m - 1) // m) * m


def _leaky_relu(h, negative_slope=0.01):
    # nn.LeakyReLU() default negative_slope = 0.01
    return jnp.where(h > 0, h, negative_slope * h)


def mlp_kernel(x_ref, w1_ref, b1_ref, w2_ref, b2_ref, w3_ref, b3_ref, o_ref):
    # bf16 matmul operands, f32 accumulation; elementwise math kept in f32 (VPU).
    x = x_ref[...].astype(jnp.bfloat16)

    h1 = jnp.dot(x, w1_ref[...], preferred_element_type=jnp.float32) + b1_ref[...]
    h1 = _leaky_relu(h1)

    h2 = jnp.dot(h1.astype(jnp.bfloat16), w2_ref[...],
                 preferred_element_type=jnp.float32) + b2_ref[...]
    h2 = _leaky_relu(h2)

    h3 = jnp.dot(h2.astype(jnp.bfloat16), w3_ref[...],
                 preferred_element_type=jnp.float32) + b3_ref[...]

    o_ref[...] = h3.astype(o_ref.dtype)


def init_mlp_params(key, input_shape, output_shape):
    """Mirrors MLP.__init__/init_weights in f32.

    PyTorch nn.Linear weight is (out, in); we store the transpose (in, out).
    kaiming_normal_(nonlinearity='leaky_relu', a=0) -> std = sqrt(2 / fan_in).
    """
    delta = (input_shape - output_shape) // 3
    dim1 = input_shape - delta
    dim2 = dim1 - delta
    dims = [(input_shape, dim1), (dim1, dim2), (dim2, output_shape)]
    keys = jax.random.split(key, 3)
    params = {}
    for i, ((fan_in, fan_out), k) in enumerate(zip(dims, keys), start=1):
        std = (2.0 / fan_in) ** 0.5
        params[f"w{i}"] = std * jax.random.normal(k, (fan_in, fan_out), dtype=jnp.float32)
        params[f"b{i}"] = jnp.zeros((1, fan_out), dtype=jnp.float32)
    return params


def make_kernel_params(params):
    """Pad every feature dim up to a multiple of 128 lanes; weights -> bf16, biases stay f32.

    Zero padding is exact: padded input columns are zero, padded weight rows/columns and
    biases are zero, so padded activation columns stay zero through the network and are
    sliced off in the wrapper.
    """
    kparams = {}
    for i in (1, 2, 3):
        w, b = params[f"w{i}"], params[f"b{i}"]
        in_p = _round_up(w.shape[0], LANE)
        out_p = _round_up(w.shape[1], LANE)
        wp = jnp.zeros((in_p, out_p), jnp.float32).at[: w.shape[0], : w.shape[1]].set(w)
        bp = jnp.zeros((1, out_p), jnp.float32).at[:, : b.shape[1]].set(b)
        kparams[f"w{i}"] = wp.astype(jnp.bfloat16)  # halves weight HBM->VMEM DMA bytes
        kparams[f"b{i}"] = bp                       # added to the f32 accumulator
    return kparams


def mlp_forward(x, kparams, out_dim, *, batch_tile=512):
    """x: (B, in_dim) f32. kparams: padded/bf16 params from make_kernel_params."""
    B, in_dim = x.shape
    in_p = kparams["w1"].shape[0]
    out_p = kparams["w3"].shape[1]

    tb = min(batch_tile, _round_up(B, SUBLANE))   # batch tile (rows per grid step)
    bp = _round_up(B, tb)
    num_tiles = bp // tb

    # Zero-pad batch rows / input feature columns up to the tiled shape.
    xp = jnp.zeros((bp, in_p), x.dtype).at[:B, :in_dim].set(x)

    def const2d(i):
        return (0, 0)

    def resident(a):  # weights/biases: same block every step -> VMEM-resident
        return pl.BlockSpec(a.shape, const2d, memory_space=pltpu.VMEM)

    out = pl.pallas_call(
        mlp_kernel,
        out_shape=jax.ShapeDtypeStruct((bp, out_p), x.dtype),
        grid=(num_tiles,),
        in_specs=[
            pl.BlockSpec((tb, in_p), lambda i: (i, 0), memory_space=pltpu.VMEM),
            resident(kparams["w1"]), resident(kparams["b1"]),
            resident(kparams["w2"]), resident(kparams["b2"]),
            resident(kparams["w3"]), resident(kparams["b3"]),
        ],
        out_specs=pl.BlockSpec((tb, out_p), lambda i: (i, 0), memory_space=pltpu.VMEM),
        compiler_params=pltpu.CompilerParams(
            dimension_semantics=("parallel",),   # shards batch tiles across TCs on v7x
        ),
    )(xp, kparams["w1"], kparams["b1"], kparams["w2"], kparams["b2"],
      kparams["w3"], kparams["b3"])

    return out[:B, :out_dim]


def mlp_reference(x, params):
    h = _leaky_relu(x @ params["w1"] + params["b1"])
    h = _leaky_relu(h @ params["w2"] + params["b2"])
    return h @ params["w3"] + params["b3"]


if __name__ == "__main__":
    key = jax.random.PRNGKey(0)
    k_x, k_x2, k_p = jax.random.split(key, 3)

    input_shape = 64
    output_shape = 16  # delta = 16 -> dims: 64 -> 48 -> 32 -> 16

    params = init_mlp_params(k_p, input_shape, output_shape)
    kparams = make_kernel_params(params)

    # Case 1: tiny batch, single grid step.
    x = jax.random.normal(k_x, (8, input_shape), dtype=jnp.float32)
    out = jax.block_until_ready(mlp_forward(x, kparams, output_shape))
    ref = mlp_reference(x, params)
    assert out.shape == (8, output_shape)
    # bf16 MXU operands (f32 accumulate) -> looser tolerance than pure f32.
    assert jnp.allclose(out, ref, atol=5e-2, rtol=5e-2), "mismatch vs reference (case 1)"

    # Case 2: ragged batch over a multi-step grid (exercises tiling + batch padding).
    x2 = jax.random.normal(k_x2, (40, input_shape), dtype=jnp.float32)
    out2 = jax.block_until_ready(mlp_forward(x2, kparams, output_shape, batch_tile=16))
    ref2 = mlp_reference(x2, params)
    assert out2.shape == (40, output_shape)
    assert jnp.allclose(out2, ref2, atol=5e-2, rtol=5e-2), "mismatch vs reference (case 2)"

    print("KERNEL_OK")
</pallas_src>

<mosaic_0001>
module attributes {stable_mosaic.version = 11 : i64} {
  func.func @mlp_kernel(%arg0: i32, %arg1: memref<8x128xf32, #tpu.memory_space<vmem>>, %arg2: memref<128x128xbf16, #tpu.memory_space<vmem>>, %arg3: memref<1x128xf32, #tpu.memory_space<vmem>>, %arg4: memref<128x128xbf16, #tpu.memory_space<vmem>>, %arg5: memref<1x128xf32, #tpu.memory_space<vmem>>, %arg6: memref<128x128xbf16, #tpu.memory_space<vmem>>, %arg7: memref<1x128xf32, #tpu.memory_space<vmem>>, %arg8: memref<8x128xf32, #tpu.memory_space<vmem>>) attributes {dimension_semantics = [#tpu.dimension_semantics<parallel>], iteration_bounds = array<i64: 1>, scalar_prefetch = 0 : i64, scratch_operands = 0 : i64, tpu.core_type = #tpu.core_type<tc>, window_params = [{transform_indices = @transform_0, window_bounds = array<i64: 8, 128>}, {pipeline_mode = #tpu.pipeline_mode<synchronous>, transform_indices = @transform_1, window_bounds = array<i64: 128, 128>}, {pipeline_mode = #tpu.pipeline_mode<synchronous>, transform_indices = @transform_2, window_bounds = array<i64: 1, 128>}, {pipeline_mode = #tpu.pipeline_mode<synchronous>, transform_indices = @transform_3, window_bounds = array<i64: 128, 128>}, {pipeline_mode = #tpu.pipeline_mode<synchronous>, transform_indices = @transform_4, window_bounds = array<i64: 1, 128>}, {pipeline_mode = #tpu.pipeline_mode<synchronous>, transform_indices = @transform_5, window_bounds = array<i64: 128, 128>}, {pipeline_mode = #tpu.pipeline_mode<synchronous>, transform_indices = @transform_6, window_bounds = array<i64: 1, 128>}, {transform_indices = @transform_7, window_bounds = array<i64: 8, 128>}]} {
    %c0 = arith.constant 0 : index
    %c0_0 = arith.constant 0 : index
    %0 = vector.load %arg1[%c0, %c0_0] : memref<8x128xf32, #tpu.memory_space<vmem>>, vector<8x128xf32>
    %1 = arith.truncf %0 : vector<8x128xf32> to vector<8x128xbf16>
    %c0_1 = arith.constant 0 : index
    %c0_2 = arith.constant 0 : index
    %2 = vector.load %arg2[%c0_1, %c0_2] : memref<128x128xbf16, #tpu.memory_space<vmem>>, vector<128x128xbf16>
    %cst = arith.constant dense<0.000000e+00> : vector<8x128xf32>
    %3 = tpu.matmul %1, %2, %cst {dimension_numbers = #tpu.dot_dimension_numbers<[1], [0], [0], [1], [0, 0, 1, 1], [], []>} : vector<8x128xbf16>, vector<128x128xbf16>, vector<8x128xf32> -> vector<8x128xf32>
    %c0_3 = arith.constant 0 : index
    %c0_4 = arith.constant 0 : index
    %4 = vector.load %arg3[%c0_3, %c0_4] : memref<1x128xf32, #tpu.memory_space<vmem>>, vector<1x128xf32>
    %5 = vector.broadcast %4 : vector<1x128xf32> to vector<8x128xf32>
    %6 = arith.addf %3, %5 : vector<8x128xf32>
    %cst_5 = arith.constant 0.000000e+00 : f32
    %7 = vector.broadcast %cst_5 : f32 to vector<8x128xf32>
    %8 = arith.cmpf ogt, %6, %7 : vector<8x128xf32>
    %cst_6 = arith.constant 0.00999999977 : f32
    %9 = vector.broadcast %cst_6 : f32 to vector<8x128xf32>
    %10 = arith.mulf %9, %6 : vector<8x128xf32>
    %11 = arith.select %8, %6, %10 : vector<8x128xi1>, vector<8x128xf32>
    %12 = arith.truncf %11 : vector<8x128xf32> to vector<8x128xbf16>
    %c0_7 = arith.constant 0 : index
    %c0_8 = arith.constant 0 : index
    %13 = vector.load %arg4[%c0_7, %c0_8] : memref<128x128xbf16, #tpu.memory_space<vmem>>, vector<128x128xbf16>
    %cst_9 = arith.constant dense<0.000000e+00> : vector<8x128xf32>
    %14 = tpu.matmul %12, %13, %cst_9 {dimension_numbers = #tpu.dot_dimension_numbers<[1], [0], [0], [1], [0, 0, 1, 1], [], []>} : vector<8x128xbf16>, vector<128x128xbf16>, vector<8x128xf32> -> vector<8x128xf32>
    %c0_10 = arith.constant 0 : index
    %c0_11 = arith.constant 0 : index
    %15 = vector.load %arg5[%c0_10, %c0_11] : memref<1x128xf32, #tpu.memory_space<vmem>>, vector<1x128xf32>
    %16 = vector.broadcast %15 : vector<1x128xf32> to vector<8x128xf32>
    %17 = arith.addf %14, %16 : vector<8x128xf32>
    %cst_12 = arith.constant 0.000000e+00 : f32
    %18 = vector.broadcast %cst_12 : f32 to vector<8x128xf32>
    %19 = arith.cmpf ogt, %17, %18 : vector<8x128xf32>
    %cst_13 = arith.constant 0.00999999977 : f32
    %20 = vector.broadcast %cst_13 : f32 to vector<8x128xf32>
    %21 = arith.mulf %20, %17 : vector<8x128xf32>
    %22 = arith.select %19, %17, %21 : vector<8x128xi1>, vector<8x128xf32>
    %23 = arith.truncf %22 : vector<8x128xf32> to vector<8x128xbf16>
    %c0_14 = arith.constant 0 : index
    %c0_15 = arith.constant 0 : index
    %24 = vector.load %arg6[%c0_14, %c0_15] : memref<128x128xbf16, #tpu.memory_space<vmem>>, vector<128x128xbf16>
    %cst_16 = arith.constant dense<0.000000e+00> : vector<8x128xf32>
    %25 = tpu.matmul %23, %24, %cst_16 {dimension_numbers = #tpu.dot_dimension_numbers<[1], [0], [0], [1], [0, 0, 1, 1], [], []>} : vector<8x128xbf16>, vector<128x128xbf16>, vector<8x128xf32> -> vector<8x128xf32>
    %c0_17 = arith.constant 0 : index
    %c0_18 = arith.constant 0 : index
    %26 = vector.load %arg7[%c0_17, %c0_18] : memref<1x128xf32, #tpu.memory_space<vmem>>, vector<1x128xf32>
    %27 = vector.broadcast %26 : vector<1x128xf32> to vector<8x128xf32>
    %28 = arith.addf %25, %27 : vector<8x128xf32>
    %c0_19 = arith.constant 0 : index
    %c0_20 = arith.constant 0 : index
    %29 = vector.load %arg8[%c0_19, %c0_20] : memref<8x128xf32, #tpu.memory_space<vmem>>, vector<8x128xf32>
    tpu.vector_store %arg8[%c0_19, %c0_20], %28 {strides = array<i32>} : memref<8x128xf32, #tpu.memory_space<vmem>>, vector<8x128xf32>,
    return
  }
  func.func @transform_0(%arg0: i32) -> (i32, i32) {
    %c0_i32 = arith.constant 0 : i32
    %c0_i32_0 = arith.constant 0 : i32
    return %arg0, %c0_i32 : i32, i32
  }
  func.func @transform_1(%arg0: i32) -> (i32, i32) {
    %c0_i32 = arith.constant 0 : i32
    %c0_i32_0 = arith.constant 0 : i32
    %c0_i32_1 = arith.constant 0 : i32
    return %c0_i32, %c0_i32_0 : i32, i32
  }
  func.func @transform_2(%arg0: i32) -> (i32, i32) {
    %c0_i32 = arith.constant 0 : i32
    %c0_i32_0 = arith.constant 0 : i32
    %c0_i32_1 = arith.constant 0 : i32
    return %c0_i32, %c0_i32_0 : i32, i32
  }
  func.func @transform_3(%arg0: i32) -> (i32, i32) {
    %c0_i32 = arith.constant 0 : i32
    %c0_i32_0 = arith.constant 0 : i32
    %c0_i32_1 = arith.constant 0 : i32
    return %c0_i32, %c0_i32_0 : i32, i32
  }
  func.func @transform_4(%arg0: i32) -> (i32, i32) {
    %c0_i32 = arith.constant 0 : i32
    %c0_i32_0 = arith.constant 0 : i32
    %c0_i32_1 = arith.constant 0 : i32
    return %c0_i32, %c0_i32_0 : i32, i32
  }
  func.func @transform_5(%arg0: i32) -> (i32, i32) {
    %c0_i32 = arith.constant 0 : i32
    %c0_i32_0 = arith.constant 0 : i32
    %c0_i32_1 = arith.constant 0 : i32
    return %c0_i32, %c0_i32_0 : i32, i32
  }
  func.func @transform_6(%arg0: i32) -> (i32, i32) {
    %c0_i32 = arith.constant 0 : i32
    %c0_i32_0 = arith.constant 0 : i32
    %c0_i32_1 = arith.constant 0 : i32
    return %c0_i32, %c0_i32_0 : i32, i32
  }
  func.func @transform_7(%arg0: i32) -> (i32, i32) {
    %c0_i32 = arith.constant 0 : i32
    %c0_i32_0 = arith.constant 0 : i32
    return %arg0, %c0_i32 : i32, i32
  }
}

</mosaic_0001>

<bundles_post_ra>
// kernel: tpu_custom_call.1
= control target key start
LH: loop header
LB: loop body
LE: loop exit
PB: predicated region body
PF: predicated region fallthrough
CT: control target
= control target key end

     0   :  { %12 = vsyncpa [#allocation3], 0  ;;  %s864_s0 = inlined_call_operand.hbm [shape: f32[8,128], index: 0, kind: input, shape index: {}]   ;;  %s865_s1 = inlined_call_operand.hbm [shape: bf16[128,128], index: 1, kind: input, shape index: {}]   ;;  %s866_s2 = inlined_call_operand.vmem [shape: f32[1,128], index: 2, kind: input, shape index: {}]   ;;  %s867_s3 = inlined_call_operand.hbm [shape: bf16[128,128], index: 3, kind: input, shape index: {}]   ;;  %s868_s4 = inlined_call_operand.vmem [shape: f32[1,128], index: 4, kind: input, shape index: {}]   ;;  %s869_s5 = inlined_call_operand.hbm [shape: bf16[128,128], index: 5, kind: input, shape index: {}]   ;;  %s870_s6 = inlined_call_operand.vmem [shape: f32[1,128], index: 6, kind: input, shape index: {}]   ;;  %s871_s7 = inlined_call_operand.hbm [shape: f32[8,128], index: 7, kind: output, shape index: {}]  }
   0x1   :  { %13 = vsyncpa [#allocation6], 0 }
   0x2   :  { %14 = vsyncpa [#allocation9], 0 }
   0x3   :  { %15 = vsyncpa [#allocation4], 0  ;;  %s707_s24 = smov [#allocation5]   ;;  %s589_s28 = scalar_lea.hbm %s865_s1, 1024 }
   0x4   :  { %s31_s25 = sshll.u32 %s707_s24, 4  ;;  %p590_p0 = scmp.ne.s32.totalorder %s865_s1, %s589_s28  ;;  %s32_s25 = int_to_ptr.vmem [resolvable:$true] %s31_s25 }
   0x5   :  { %p593_p1 = scmp.lt.u32.totalorder %s589_s28, %s865_s1 }
   0x7   :  { %p595_p2 = pnand %p593_p1, %p590_p0 }
   0x9   :  { %598 = shalt.err (!%p595_p2)
}
   0xa   :  { %s599_s10 = scalar_lea.vmem %s32_s25, 1024  ;;  %p604_p4 = scmp.lt.s32.totalorder %s32_s25, %s32_s25 }
   0xb   :  { %p600_p3 = scmp.ne.s32.totalorder %s32_s25, %s599_s10  ;;  %p605_p5 = scmp.lt.s32.totalorder %s599_s10, %s599_s10 }
   0xd   :  { %p606_p6 = por %p605_p5, %p604_p4 }
   0xf   :  { %p607_p7 = pnand %p606_p6, %p600_p3 }
  0x11   :  { %610 = shalt.err (!%p607_p7)
}
  0x12   :  { %s708_s11 = smov 64   ;;  %s709_s12 = smov 4  }
  0x13   :  { %37 = dma.hbm_to_vmem [thread:$0]  %s865_s1, 1024, %s32_s25, [#allocation6], %s708_s11, %s708_s11, %s709_s12  }
  0x14   :  { %s710_s15 = smov [#allocation2]   ;;  %s711_s17 = smov [#allocation7]  }
  0x15   :  { %s22_s16 = sshll.u32 %s710_s15, 4  ;;  %s45_s18 = sshll.u32 %s711_s17, 4  ;;  %s23_s16 = int_to_ptr.vmem [resolvable:$true] %s22_s16  ;;  %s46_s18 = int_to_ptr.vmem [resolvable:$true] %s45_s18 }
  0x16   :  { %s611_s21 = scalar_lea.hbm %s864_s0, 128 }
  0x17   :  { %p612_p8 = scmp.ne.s32.totalorder %s864_s0, %s611_s21  ;;  %p615_p9 = scmp.lt.u32.totalorder %s611_s21, %s864_s0 }
  0x19   :  { %p617_p10 = pnand %p615_p9, %p612_p8 }
  0x1b   :  { %620 = shalt.err (!%p617_p10)
}
  0x1c   :  { %s621_s1 = scalar_lea.vmem %s23_s16, 128  ;;  %p626_p12 = scmp.lt.s32.totalorder %s23_s16, %s23_s16 }
  0x1d   :  { %p622_p11 = scmp.ne.s32.totalorder %s23_s16, %s621_s1  ;;  %p627_p13 = scmp.lt.s32.totalorder %s621_s1, %s621_s1 }
  0x1f   :  { %p628_p0 = por %p627_p13, %p626_p12 }
  0x21   :  { %p629_p1 = pnand %p628_p0, %p622_p11 }
  0x23   :  { %632 = shalt.err (!%p629_p1)
}
  0x24   :  { %25 = dma.hbm_to_vmem [thread:$0]  %s864_s0, 128, %s23_s16, [#allocation3]  }
  0x25   :  { %s633_s30 = scalar_lea.hbm %s867_s3, 1024 }
  0x26   :  { %p634_p2 = scmp.ne.s32.totalorder %s867_s3, %s633_s30  ;;  %p637_p3 = scmp.lt.u32.totalorder %s633_s30, %s867_s3 }
  0x28   :  { %p639_p4 = pnand %p637_p3, %p634_p2 }
  0x2a   :  { %642 = shalt.err (!%p639_p4)
}
  0x2b   :  { %s643_s14 = scalar_lea.vmem %s46_s18, 1024  ;;  %p648_p6 = scmp.lt.s32.totalorder %s46_s18, %s46_s18 }
  0x2c   :  { %p644_p5 = scmp.ne.s32.totalorder %s46_s18, %s643_s14  ;;  %p649_p7 = scmp.lt.s32.totalorder %s643_s14, %s643_s14 }
  0x2e   :  { %p650_p8 = por %p649_p7, %p648_p6 }
  0x30   :  { %p651_p9 = pnand %p650_p8, %p644_p5 }
  0x32   :  { %654 = shalt.err (!%p651_p9)
}
  0x33   :  { %51 = dma.hbm_to_vmem [thread:$0]  %s867_s3, 1024, %s46_s18, [#allocation6], %s708_s11, %s708_s11, %s709_s12  }
  0x34   :  { %s712_s16 = smov [#allocation8]   ;;  %s655_s21 = scalar_lea.hbm %s869_s5, 1024 }
  0x35   :  { %s59_s17 = sshll.u32 %s712_s16, 4  ;;  %p656_p10 = scmp.ne.s32.totalorder %s869_s5, %s655_s21  ;;  %s60_s17 = int_to_ptr.vmem [resolvable:$true] %s59_s17 }
  0x36   :  { %p659_p11 = scmp.lt.u32.totalorder %s655_s21, %s869_s5 }
  0x38   :  { %p661_p12 = pnand %p659_p11, %p656_p10 }
  0x3a   :  { %664 = shalt.err (!%p661_p12)
}
  0x3b   :  { %s665_s1 = scalar_lea.vmem %s60_s17, 1024  ;;  %p670_p0 = scmp.lt.s32.totalorder %s60_s17, %s60_s17 }
  0x3c   :  { %p666_p13 = scmp.ne.s32.totalorder %s60_s17, %s665_s1  ;;  %p671_p1 = scmp.lt.s32.totalorder %s665_s1, %s665_s1 }
  0x3e   :  { %p672_p2 = por %p671_p1, %p670_p0 }
  0x40   :  { %p673_p3 = pnand %p672_p2, %p666_p13 }
  0x42   :  { %676 = shalt.err (!%p673_p3)
}
  0x43   :  { %65 = dma.hbm_to_vmem [thread:$0]  %s869_s5, 1024, %s60_s17, [#allocation9], %s708_s11, %s708_s11, %s709_s12  }
  0x44   :  { %699 = dma.done.wait [#allocation3], 128  }
  0x45   :  { %700 = vsyncadd [#allocation3], 4294967168 }
  0x46   :  { %701 = dma.done.wait [#allocation6], 2048  }
  0x47   :  { %702 = vsyncadd [#allocation6], 4294965248 }
  0x48   :  { %703 = dma.done.wait [#allocation9], 1024  }
  0x49   :  { %704 = vsyncadd [#allocation9], 4294966272  ;;  %v713_v0 = vmov 0.0   ;;  %vm714_vm0 = vmmov 0   ;;  %v565_v1 = vld [vmem:[#allocation5] sm:$0xff]   ;;  %v566_v2 = vld [vmem:[#allocation5 + $0x8] sm:$0xff]  }
  0x4a   :  { %496 = vmatprep.subr.bf16.mxu0 %v713_v0  ;;  %512 = vmatprep.mubr.msk.bf16.mxu0 %vm714_vm0, %v713_v0  ;;  %v567_v3 = vld [vmem:[#allocation5 + $0x10] sm:$0xff]   ;;  %v573_v4 = vld [vmem:[#allocation7] sm:$0xff]   ;;  %v568_v5 = vld [vmem:[#allocation5 + $0x18] sm:$0xff]   ;;  %s715_s28 = smov [#allocation10]  }
  0x4b   :  { %516 = vmatprep.subr.bf16.mxu1 %v713_v0  ;;  %532 = vmatprep.mubr.msk.bf16.mxu1 %vm714_vm0, %v713_v0  ;;  %v574_v6 = vld [vmem:[#allocation7 + $0x8] sm:$0xff]   ;;  %v569_v7 = vld [vmem:[#allocation5 + $0x20] sm:$0xff]   ;;  %v575_v8 = vld [vmem:[#allocation7 + $0x10] sm:$0xff]   ;;  %s431_s29 = sshll.u32 %s715_s28, 4  ;;  %s432_s29 = int_to_ptr.vmem [resolvable:$true] %s431_s29 }
  0x4c   :  { %497 = vmatpush3.bf16.msra.mxu0 %v565_v1  ;;  %517 = vmatpush3.bf16.msra.mxu1 %v573_v4  ;;  %v570_v9 = vld [vmem:[#allocation5 + $0x28] sm:$0xff]   ;;  %v576_v10 = vld [vmem:[#allocation7 + $0x18] sm:$0xff]   ;;  %v571_v11 = vld [vmem:[#allocation5 + $0x30] sm:$0xff]   ;;  %p682_p5 = scmp.lt.s32.totalorder %s432_s29, %s432_s29 }
  0x4d   :  { %498 = vmatprep.subr.bf16.mxu0 %v713_v0  ;;  %518 = vmatprep.subr.bf16.mxu1 %v713_v0  ;;  %v577_v12 = vld [vmem:[#allocation7 + $0x20] sm:$0xff]   ;;  %v572_v13 = vld [vmem:[#allocation5 + $0x38] sm:$0xff]   ;;  %v578_v15 = vld [vmem:[#allocation7 + $0x28] sm:$0xff]  }
  0x4e   :  { %v81_v14 = vld [vmem:[#allocation2] sm:$0xff]  ;;  %v579_v17 = vld [vmem:[#allocation7 + $0x30] sm:$0xff]   ;;  %v581_v19 = vld [vmem:[#allocation8] sm:$0xff]  }
  0x4f   :  { %v82_v16 = vpack.c.bf16 %v81_v14, %v81_v14  ;;  %v580_v18 = vld [vmem:[#allocation7 + $0x38] sm:$0xff]   ;;  %v582_v20 = vld [vmem:[#allocation8 + $0x8] sm:$0xff]   ;;  %v583_v21 = vld [vmem:[#allocation8 + $0x10] sm:$0xff]  }
  0x50   :  { %499 = vmatpush3.bf16.msra.mxu0 %v566_v2  ;;  %519 = vmatpush3.bf16.msra.mxu1 %v574_v6  ;;  %v584_v22 = vld [vmem:[#allocation8 + $0x18] sm:$0xff]   ;;  %v585_v23 = vld [vmem:[#allocation8 + $0x20] sm:$0xff]   ;;  %v586_v24 = vld [vmem:[#allocation8 + $0x28] sm:$0xff]  }
  0x51   :  { %500 = vmatprep.subr.bf16.mxu0 %v713_v0  ;;  %520 = vmatprep.subr.bf16.mxu1 %v713_v0  ;;  %v442_v25 = vld [vmem:[%s866_s2] ss:$0 sm:$0xff]  ;;  %v587_v34 = vld [vmem:[#allocation8 + $0x30] sm:$0xff]  }
  0x52   :  { %v588_v35 = vld [vmem:[#allocation8 + $0x38] sm:$0xff]  }
  0x53   :  { %v451_v36 = vld [vmem:[%s868_s4] ss:$0 sm:$0xff]  ;;  %s677_s4 = scalar_lea.vmem %s432_s29, 128 }
  0x54   :  { %501 = vmatpush3.bf16.msra.mxu0 %v567_v3  ;;  %521 = vmatpush3.bf16.msra.mxu1 %v575_v8  ;;  %v460_v45 = vld [vmem:[%s870_s6] ss:$0 sm:$0xff]  ;;  %p678_p4 = scmp.ne.s32.totalorder %s432_s29, %s677_s4  ;;  %p683_p6 = scmp.lt.s32.totalorder %s677_s4, %s677_s4 }
  0x55   :  { %502 = vmatprep.subr.bf16.mxu0 %v713_v0  ;;  %522 = vmatprep.subr.bf16.mxu1 %v713_v0 }
  0x56   :  { %p684_p7 = por %p683_p6, %p682_p5 }
  0x58   :  { %503 = vmatpush3.bf16.msra.mxu0 %v568_v5  ;;  %523 = vmatpush3.bf16.msra.mxu1 %v576_v10  ;;  %p685_p8 = pnand %p684_p7, %p678_p4 }
  0x59   :  { %504 = vmatprep.subr.bf16.mxu0 %v713_v0  ;;  %524 = vmatprep.subr.bf16.mxu1 %v713_v0 }
  0x5c   :  { %505 = vmatpush3.bf16.msra.mxu0 %v569_v7  ;;  %525 = vmatpush3.bf16.msra.mxu1 %v577_v12 }
  0x5d   :  { %506 = vmatprep.subr.bf16.mxu0 %v713_v0  ;;  %526 = vmatprep.subr.bf16.mxu1 %v713_v0 }
  0x60   :  { %507 = vmatpush3.bf16.msra.mxu0 %v570_v9  ;;  %527 = vmatpush3.bf16.msra.mxu1 %v578_v15 }
  0x61   :  { %508 = vmatprep.subr.bf16.mxu0 %v713_v0  ;;  %528 = vmatprep.subr.bf16.mxu1 %v713_v0 }
  0x64   :  { %509 = vmatpush3.bf16.msra.mxu0 %v571_v11  ;;  %529 = vmatpush3.bf16.msra.mxu1 %v579_v17 }
  0x65   :  { %510 = vmatprep.subr.bf16.mxu0 %v713_v0  ;;  %530 = vmatprep.subr.bf16.mxu1 %v713_v0 }
  0x68   :  { %511 = vmatpush3.bf16.msra.mxu0 %v572_v13  ;;  %531 = vmatpush3.bf16.msra.mxu1 %v580_v18 }
  0x69   :  { %536 = vmatprep.subr.bf16.mxu0 %v713_v0 }
  0x6b   :  { %513 = vmatmul.mubr.bf16.vlgmr.msra.gmra.mrb[0].mxu0 %v82_v16 }
  0x6c   :  { %552 = vmatprep.mubr.msk.bf16.mxu0 %vm714_vm0, %v713_v0  ;;  %537 = vmatpush3.bf16.msra.mxu0 %v581_v19 }
  0x6d   :  { %538 = vmatprep.subr.bf16.mxu0 %v713_v0 }
  0x70   :  { %539 = vmatpush3.bf16.msra.mxu0 %v582_v20 }
  0x71   :  { %540 = vmatprep.subr.bf16.mxu0 %v713_v0 }
  0x74   :  { %541 = vmatpush3.bf16.msra.mxu0 %v583_v21 }
  0x75   :  { %542 = vmatprep.subr.bf16.mxu0 %v713_v0 }
  0x78   :  { %543 = vmatpush3.bf16.msra.mxu0 %v584_v22 }
  0x79   :  { %544 = vmatprep.subr.bf16.mxu0 %v713_v0 }
  0x7c   :  { %545 = vmatpush3.bf16.msra.mxu0 %v585_v23 }
  0x7d   :  { %546 = vmatprep.subr.bf16.mxu0 %v713_v0 }
  0x80   :  { %547 = vmatpush3.bf16.msra.mxu0 %v586_v24 }
  0x81   :  { %548 = vmatprep.subr.bf16.mxu0 %v713_v0 }
  0x84   :  { %549 = vmatpush3.bf16.msra.mxu0 %v587_v34 }
  0x85   :  { %550 = vmatprep.subr.bf16.mxu0 %v713_v0 }
  0x88   :  { %551 = vmatpush3.bf16.msra.mxu0 %v588_v35 }
 0x13e   :  { %v188_v26 = vpop.f32.mrb[0].mxu0 }
 0x13f   :  { %v189_v27 = vadd.f32 %v442_v25, %v188_v26  ;;  %v514_v28 = vpop.f32.mrb[1].mxu0 }
 0x140   :  { %v191_v29 = vpop.f32.mrb[2].mxu0 }
 0x141   :  { %vm194_vm1 = vcmp.gt.f32.partialorder %v189_v27, 0.0  ;;  %v195_v30 = vmul.f32 0.01, %v189_v27  ;;  %v515_v31 = vpop.f32.mrb[3].mxu0 }
 0x143   :  { %v196_v32 = vsel %vm194_vm1, %v189_v27, %v195_v30 }
 0x144   :  { %v197_v33 = vpack.c.bf16 %v196_v32, %v196_v32 }
 0x146   :  { %533 = vmatmul.mubr.bf16.vlgmr.msra.gmra.mrb[0].mxu1 %v197_v33 }
 0x219   :  { %v303_v37 = vpop.f32.mrb[0].mxu1 }
 0x21a   :  { %v304_v38 = vadd.f32 %v451_v36, %v303_v37  ;;  %v534_v39 = vpop.f32.mrb[1].mxu1 }
 0x21b   :  { %v306_v40 = vpop.f32.mrb[2].mxu1 }
 0x21c   :  { %vm309_vm2 = vcmp.gt.f32.partialorder %v304_v38, 0.0  ;;  %v310_v41 = vmul.f32 0.01, %v304_v38  ;;  %v535_v42 = vpop.f32.mrb[3].mxu1 }
 0x21e   :  { %v311_v43 = vsel %vm309_vm2, %v304_v38, %v310_v41 }
 0x21f   :  { %v312_v44 = vpack.c.bf16 %v311_v43, %v311_v43 }
 0x221   :  { %553 = vmatmul.mubr.bf16.vlgmr.msra.gmra.mrb[4].mxu0 %v312_v44 }
 0x2f4   :  { %v418_v46 = vpop.f32.mrb[4].mxu0 }
 0x2f5   :  { %v419_v47 = vadd.f32 %v460_v45, %v418_v46  ;;  %v554_v48 = vpop.f32.mrb[5].mxu0 }
 0x2f6   :  { %v421_v49 = vpop.f32.mrb[6].mxu0 }
 0x2f7   :  { %424 = vst [vmem:[#allocation10] sm:$0xff] %v419_v47  ;;  %v555_v50 = vpop.f32.mrb[7].mxu0 }
 0x2f8   :  { %688 = shalt.err (!%p685_p8)
}
 0x2f9   :  { %s689_s6 = scalar_lea.hbm %s871_s7, 128 }
 0x2fa   :  { %p690_p9 = scmp.ne.s32.totalorder %s871_s7, %s689_s6  ;;  %p693_p10 = scmp.lt.u32.totalorder %s689_s6, %s871_s7 }
 0x2fc   :  { %p695_p11 = pnand %p693_p10, %p690_p9 }
 0x2fe   :  { %698 = shalt.err (!%p695_p11)
}
 0x2ff   :  { %434 = dma.vmem_to_hbm [thread:$0]  %s432_s29, 128, %s871_s7, [#allocation4]  }
 0x300   :  { %705 = dma.done.wait [#allocation4], 128  }
 0x301   :  { %706 = vsyncadd [#allocation4], 4294967168 }
 0x302   :  { %438 = vsyncpa [#allocation3], 1 }
 0x303   :  { %439 = vsyncpa [#allocation6], 1 }
 0x304   :  { %440 = vsyncpa [#allocation9], 1 }
 0x305   :  { %441 = vsyncpa [#allocation4], 1 }

</bundles_post_ra>
